<compile_context>
chip_gen: v7x
topology: tpu7x:2x2x1
jax: 0.10.0
libtpu: 0.0.40
codegen_flags: <defaults>
</compile_context>

<pallas_src>
import functools
import math

import jax
import jax.numpy as jnp
from jax.experimental import pallas as pl
from jax.experimental.pallas import tpu as pltpu


def _round_up(x, m):
    return (x + m - 1) // m * m


def _choose_row_tile(rows, requested=None, max_tile=512):
    """Multiple-of-8 row tile that keeps >=2 grid steps whenever rows allow it."""
    if requested is not None:
        tm = max(8, (int(requested) // 8) * 8)
    else:
        tm = max_tile
    tm = min(tm, _round_up(rows, 8))
    while tm > 8 and pl.cdiv(rows, tm) < 2:
        tm = max(8, (tm // 2) // 8 * 8)
    return max(8, tm)


def _quantize_dequantize(w, n_bits=7):
    # quantized_conv.forward: step = max|w| / (2**7 - 1); QW = round(w/step); use QW*step.
    step = jnp.max(jnp.abs(w)) / (2.0 ** n_bits - 1.0)
    return jnp.round(w / step) * step


def _im2col_3x3_pad1(x_nchw):
    """NCHW -> (N*H*W, 9*Cin) patches for a 3x3 / stride-1 / pad-1 convolution."""
    n, c, h, w = x_nchw.shape
    x = jnp.transpose(x_nchw, (0, 2, 3, 1))                       # NHWC
    x = jnp.pad(x, ((0, 0), (1, 1), (1, 1), (0, 0)))
    taps = [x[:, dy:dy + h, dx:dx + w, :] for dy in range(3) for dx in range(3)]
    patches = jnp.stack(taps, axis=3)                             # (N, H, W, 9, Cin)
    return patches.reshape(n * h * w, 9 * c)


# ----------------------------------------------------------------------------------
# Fused quantized-conv1 + bn1 + relu  (stage 1 of ResNet1.forward)
# ----------------------------------------------------------------------------------
def _conv_bn_relu_kernel(p_ref, w_ref, s_ref, b_ref, o_ref):
    # p_ref: (TM, K)      streamed im2col patch tile
    # w_ref: (K, COUT)    VMEM-resident dequantized conv1 weights
    # s_ref: (1, COUT)    VMEM-resident folded BN scale  (gamma * rsqrt(var+eps))
    # b_ref: (1, COUT)    VMEM-resident folded BN bias   (beta - mean * scale)
    # o_ref: (TM, COUT)
    acc = jnp.dot(p_ref[...], w_ref[...], preferred_element_type=jnp.float32)
    o_ref[...] = jnp.maximum(acc * s_ref[...] + b_ref[...], 0.0).astype(o_ref.dtype)


@functools.partial(jax.jit, static_argnames=("eps", "row_tile"))
def resnet1_stem(x, conv_w, bn_gamma, bn_beta, bn_mean, bn_var, *,
                 eps=1e-5, row_tile=None):
    """Fused ResNet1 input stage: relu(bn1(quantized_conv1(x))) for NCHW `x`."""
    n, cin, h, w = x.shape
    cout = conv_w.shape[0]
    assert conv_w.shape[1:] == (cin, 3, 3), "conv1 is a 3x3 convolution"

    # ---- O(C) parameter prep in the wrapper (never in the kernel) ----
    w_dq = _quantize_dequantize(conv_w.astype(jnp.float32))
    # (Cout, Cin, 3, 3) -> (kh, kw, Cin, Cout) -> (9*Cin, Cout); matches im2col ordering.
    w_mat = jnp.transpose(w_dq, (2, 3, 1, 0)).reshape(9 * cin, cout)
    inv_std = jax.lax.rsqrt(bn_var.astype(jnp.float32) + eps)
    scale = (bn_gamma.astype(jnp.float32) * inv_std).reshape(1, cout)
    bias = (bn_beta.astype(jnp.float32)
            - bn_mean.astype(jnp.float32) * scale[0]).reshape(1, cout)
    # TODO(synk): training-mode BatchNorm batch statistics are not computed; this is
    # the inference-form per-channel scale/bias (running stats).
    # TODO(synk): an upstream per-input-channel normalize (mean/std) can additionally
    # be folded into w_mat / bias here instead of running as its own HBM pass.

    # ---- im2col glue (zero pad, 3x3 taps, channels-last), zero-pad K to 8-aligned ----
    patches = _im2col_3x3_pad1(x.astype(jnp.float32))             # (N*H*W, 9*Cin)
    m = n * h * w
    k = 9 * cin
    k_pad = _round_up(k, 8)
    if k_pad != k:                                                # exact: zero columns
        patches = jnp.pad(patches, ((0, 0), (0, k_pad - k)))
        w_mat = jnp.pad(w_mat, ((0, k_pad - k), (0, 0)))

    tm = _choose_row_tile(m, row_tile)
    m_pad = _round_up(m, tm)
    if m_pad != m:
        patches = jnp.pad(patches, ((0, m_pad - m), (0, 0)))

    out2 = pl.pallas_call(
        _conv_bn_relu_kernel,
        out_shape=jax.ShapeDtypeStruct((m_pad, cout), jnp.float32),
        grid_spec=pltpu.PrefetchScalarGridSpec(
            num_scalar_prefetch=0,
            grid=(m_pad // tm,),
            in_specs=[
                pl.BlockSpec((tm, k_pad), lambda i: (i, 0)),      # streamed pixel tiles
                pl.BlockSpec((k_pad, cout), lambda i: (0, 0)),    # resident weights
                pl.BlockSpec((1, cout), lambda i: (0, 0)),        # resident BN scale
                pl.BlockSpec((1, cout), lambda i: (0, 0)),        # resident BN bias
            ],
            out_specs=pl.BlockSpec((tm, cout), lambda i: (i, 0)),
        ),
        compiler_params=pltpu.CompilerParams(
            dimension_semantics=("parallel",),
        ),
    )(patches, w_mat, scale, bias)

    out = out2[:m].reshape(n, h, w, cout)
    return jnp.transpose(out, (0, 3, 1, 2))                       # NCHW


# ----------------------------------------------------------------------------------
# avg_pool2d(out, 4) + view(N, -1)  (tail of ResNet1.forward, on the 4x4 layer4 map)
# ----------------------------------------------------------------------------------
def _avgpool_flatten_kernel(x_ref, o_ref):
    # x_ref: (TM, H*W) rows indexed by (n, c); o_ref: (TM, 1)
    o_ref[...] = jnp.mean(x_ref[...], axis=-1, keepdims=True)


@functools.partial(jax.jit, static_argnames=("row_tile",))
def avg_pool_flatten(x, *, row_tile=None):
    """Mean over the full HxW map per (n, c) row; for ResNet1's 4x4 layer4 output this
    equals F.avg_pool2d(out, 4) followed by out.view(N, -1)."""
    n, c, h, w = x.shape
    rows, hw = n * c, h * w
    x2 = x.reshape(rows, hw).astype(jnp.float32)
    tm = _choose_row_tile(rows, row_tile)
    rows_pad = _round_up(rows, tm)
    if rows_pad != rows:
        x2 = jnp.pad(x2, ((0, rows_pad - rows), (0, 0)))

    out2 = pl.pallas_call(
        _avgpool_flatten_kernel,
        out_shape=jax.ShapeDtypeStruct((rows_pad, 1), jnp.float32),
        grid_spec=pltpu.PrefetchScalarGridSpec(
            num_scalar_prefetch=0,
            grid=(rows_pad // tm,),
            in_specs=[pl.BlockSpec((tm, hw), lambda i: (i, 0))],
            out_specs=pl.BlockSpec((tm, 1), lambda i: (i, 0)),
        ),
        compiler_params=pltpu.CompilerParams(
            dimension_semantics=("parallel",),
        ),
    )(x2)
    return out2[:rows].reshape(n, c)


if __name__ == "__main__":
    key = jax.random.PRNGKey(0)
    kx, kw, kg, kb, km, kv, kf = jax.random.split(key, 7)

    # --- stage 1: quantized conv1 (3->64, 3x3, stride 1, pad 1) + bn1 + relu ---
    n, cin, hh, ww, cout = 2, 3, 32, 32, 64
    x = jax.random.normal(kx, (n, cin, hh, ww), dtype=jnp.float32)
    # _initialize_weights: normal(0, sqrt(2/(k*k*Cout)))
    conv_w = jax.random.normal(kw, (cout, cin, 3, 3), dtype=jnp.float32) * math.sqrt(
        2.0 / (3 * 3 * cout))
    gamma = 0.5 + 0.1 * jax.random.normal(kg, (cout,), dtype=jnp.float32)
    beta = 0.1 * jax.random.normal(kb, (cout,), dtype=jnp.float32)
    run_mean = 0.1 * jax.random.normal(km, (cout,), dtype=jnp.float32)
    run_var = 0.5 + jax.random.uniform(kv, (cout,), dtype=jnp.float32)

    out = jax.block_until_ready(
        resnet1_stem(x, conv_w, gamma, beta, run_mean, run_var))

    # Reference: quantize/dequantize weights, f32 conv (HIGHEST so the XLA conv does
    # not drop to a bf16 MXU pass), inference BN, ReLU. The tolerance leaves margin
    # for whichever MXU pass count the Pallas matmul uses.
    w_dq = _quantize_dequantize(conv_w)
    ref = jax.lax.conv_general_dilated(
        x, w_dq, window_strides=(1, 1), padding=((1, 1), (1, 1)),
        dimension_numbers=("NCHW", "OIHW", "NCHW"),
        precision=jax.lax.Precision.HIGHEST)
    inv = jax.lax.rsqrt(run_var + 1e-5)
    ref = (ref - run_mean[None, :, None, None]) * (gamma * inv)[None, :, None, None] \
        + beta[None, :, None, None]
    ref = jnp.maximum(ref, 0.0)
    assert out.shape == (n, cout, hh, ww)
    assert jnp.allclose(out, ref, rtol=1e-2, atol=3e-3), \
        float(jnp.max(jnp.abs(out - ref)))

    # --- stage 3: avg_pool2d(., 4) + view on a layer4-shaped (N, 512, 4, 4) map ---
    feat = jax.random.normal(kf, (n, 512, 4, 4), dtype=jnp.float32)
    pooled = jax.block_until_ready(avg_pool_flatten(feat))
    ref_pool = jnp.mean(feat.reshape(n, 512, 16), axis=-1)
    assert pooled.shape == (n, 512)
    assert jnp.allclose(pooled, ref_pool, rtol=1e-5, atol=1e-6)

    print("KERNEL_OK")
</pallas_src>

<mosaic_0001>
module attributes {stable_mosaic.version = 11 : i64} {
  func.func @_conv_bn_relu_kernel(%arg0: i32, %arg1: memref<512x32xf32, #tpu.memory_space<vmem>>, %arg2: memref<32x64xf32, #tpu.memory_space<vmem>>, %arg3: memref<1x64xf32, #tpu.memory_space<vmem>>, %arg4: memref<1x64xf32, #tpu.memory_space<vmem>>, %arg5: memref<512x64xf32, #tpu.memory_space<vmem>>) attributes {dimension_semantics = [#tpu.dimension_semantics<parallel>], iteration_bounds = array<i64: 4>, scalar_prefetch = 0 : i64, scratch_operands = 0 : i64, tpu.core_type = #tpu.core_type<tc>, window_params = [{transform_indices = @transform_0, window_bounds = array<i64: 512, 32>}, {pipeline_mode = #tpu.pipeline_mode<synchronous>, transform_indices = @transform_1, window_bounds = array<i64: 32, 64>}, {pipeline_mode = #tpu.pipeline_mode<synchronous>, transform_indices = @transform_2, window_bounds = array<i64: 1, 64>}, {pipeline_mode = #tpu.pipeline_mode<synchronous>, transform_indices = @transform_3, window_bounds = array<i64: 1, 64>}, {transform_indices = @transform_4, window_bounds = array<i64: 512, 64>}]} {
    %c0 = arith.constant 0 : index
    %c0_0 = arith.constant 0 : index
    %0 = vector.load %arg1[%c0, %c0_0] : memref<512x32xf32, #tpu.memory_space<vmem>>, vector<512x32xf32>
    %c0_1 = arith.constant 0 : index
    %c0_2 = arith.constant 0 : index
    %1 = vector.load %arg2[%c0_1, %c0_2] : memref<32x64xf32, #tpu.memory_space<vmem>>, vector<32x64xf32>
    %cst = arith.constant dense<0.000000e+00> : vector<512x64xf32>
    %2 = tpu.matmul %0, %1, %cst {dimension_numbers = #tpu.dot_dimension_numbers<[1], [0], [0], [1], [0, 0, 1, 1], [], []>} : vector<512x32xf32>, vector<32x64xf32>, vector<512x64xf32> -> vector<512x64xf32>
    %c0_3 = arith.constant 0 : index
    %c0_4 = arith.constant 0 : index
    %3 = vector.load %arg3[%c0_3, %c0_4] : memref<1x64xf32, #tpu.memory_space<vmem>>, vector<1x64xf32>
    %4 = vector.broadcast %3 : vector<1x64xf32> to vector<512x64xf32>
    %5 = arith.mulf %2, %4 : vector<512x64xf32>
    %c0_5 = arith.constant 0 : index
    %c0_6 = arith.constant 0 : index
    %6 = vector.load %arg4[%c0_5, %c0_6] : memref<1x64xf32, #tpu.memory_space<vmem>>, vector<1x64xf32>
    %7 = vector.broadcast %6 : vector<1x64xf32> to vector<512x64xf32>
    %8 = arith.addf %5, %7 : vector<512x64xf32>
    %cst_7 = arith.constant 0.000000e+00 : f32
    %9 = vector.broadcast %cst_7 : f32 to vector<512x64xf32>
    %10 = arith.maximumf %8, %9 : vector<512x64xf32>
    %c0_8 = arith.constant 0 : index
    %c0_9 = arith.constant 0 : index
    %11 = vector.load %arg5[%c0_8, %c0_9] : memref<512x64xf32, #tpu.memory_space<vmem>>, vector<512x64xf32>
    tpu.vector_store %arg5[%c0_8, %c0_9], %10 {strides = array<i32>} : memref<512x64xf32, #tpu.memory_space<vmem>>, vector<512x64xf32>,
    return
  }
  func.func @transform_0(%arg0: i32) -> (i32, i32) {
    %c0_i32 = arith.constant 0 : i32
    %c0_i32_0 = arith.constant 0 : i32
    return %arg0, %c0_i32 : i32, i32
  }
  func.func @transform_1(%arg0: i32) -> (i32, i32) {
    %c0_i32 = arith.constant 0 : i32
    %c0_i32_0 = arith.constant 0 : i32
    %c0_i32_1 = arith.constant 0 : i32
    return %c0_i32, %c0_i32_0 : i32, i32
  }
  func.func @transform_2(%arg0: i32) -> (i32, i32) {
    %c0_i32 = arith.constant 0 : i32
    %c0_i32_0 = arith.constant 0 : i32
    %c0_i32_1 = arith.constant 0 : i32
    return %c0_i32, %c0_i32_0 : i32, i32
  }
  func.func @transform_3(%arg0: i32) -> (i32, i32) {
    %c0_i32 = arith.constant 0 : i32
    %c0_i32_0 = arith.constant 0 : i32
    %c0_i32_1 = arith.constant 0 : i32
    return %c0_i32, %c0_i32_0 : i32, i32
  }
  func.func @transform_4(%arg0: i32) -> (i32, i32) {
    %c0_i32 = arith.constant 0 : i32
    %c0_i32_0 = arith.constant 0 : i32
    return %arg0, %c0_i32 : i32, i32
  }
}

</mosaic_0001>

<bundles_post_ra>
// kernel: resnet1_stem.1
= control target key start
LH: loop header
LB: loop body
LE: loop exit
PB: predicated region body
PF: predicated region fallthrough
CT: control target
= control target key end

     0   :  { %9 = vsyncpa [#allocation3], 0  ;;  %s2105_s0 = inlined_call_operand.vmem [shape: f32[2048,32], index: 0, kind: input, shape index: {}]   ;;  %s2106_s1 = inlined_call_operand.vmem [shape: f32[32,64], index: 1, kind: input, shape index: {}]   ;;  %s2107_s2 = inlined_call_operand.vmem [shape: f32[1,64], index: 2, kind: input, shape index: {}]   ;;  %s2108_s3 = inlined_call_operand.vmem [shape: f32[1,64], index: 3, kind: input, shape index: {}]   ;;  %s2109_s4 = inlined_call_operand.hbm [shape: f32[2048,64], index: 4, kind: output, shape index: {}]  }
   0x1   :  { %11 = vsyncpa [#allocation3 + $0x1], 0  ;;  %s1588_s15 = smov 0   ;;  %s1590_s16 = smov 0  }
   0x2   :  { %s1592_s17 = smov 0   ;;  %s1594_s18 = smov 0  }
   0x3 LB: > { %s1609_s19 = sadd.s32 4294967295, %s1558_s18   ;;  %s1192_s20 = sadd.s32 4294967294, %s1558_s18   ;;  %s1558_s18 = sphi %s1594_s18, %s2115_s18   ;;  %s1554_s17 = sphi %s1592_s17, %s2114_s17   ;;  %s1550_s16 = sphi %s1590_s16, %s2113_s16   ;;  %s1546_s15 = sphi %s1588_s15, %s2112_s15  }
   0x4   : > { %s1613_s21 = sadd.s32 1, %s1558_s18   ;;  %s113_s22 = sadd.s32 1, %s1554_s17 }
   0x5   : > { %s110_s23 = ssub.s32 %s1558_s18, %s1613_s21  ;;  %p123_p0 = scmp.ne.s32.totalorder %s1554_s17, %s1550_s16 }
   0x6   : > { %p111_p1 = scmp.eq.s32.totalorder %s110_s23, 0  ;;  %p124_p2 = scmp.eq.s32.totalorder %s1609_s19, 3 }
   0x7   : > { %p129_p3 = scmp.ne.s32.totalorder %s1550_s16, %s1546_s15  ;;  %p130_p4 = scmp.eq.s32.totalorder %s1192_s20, 3 }
   0x8   : > { %s1624_s24 = scalar_select %p111_p1, %s1554_s17, %s113_s22  }
   0x9   : > { %p1626_p5 = por %p124_p2, %p123_p0  ;;  %p1630_p6 = por %p130_p4, %p129_p3 }
   0xa   : > { %p1195_p7 = scmp.ge.s32.totalorder %s1558_s18, 1  ;;  %p166_p8 = scmp.lt.s32.totalorder %s1558_s18, 5 }
   0xc   : > { %p167_p9 = pnand %p1195_p7, %p166_p8 }
   0xd   : > { %v263_v0 = vld [vmem:[%s2106_s1] sm:$0xff] (!%p167_p9)  ;;  %v264_v1 = vld [vmem:[%s2106_s1 + $0x8] sm:$0xff] (!%p167_p9)  ;;  %v265_v2 = vld [vmem:[%s2106_s1 + $0x10] sm:$0xff] (!%p167_p9)  ;;  %s1197_s7 = sshll.u32 (!%p167_p9), %s1609_s19, 6  ;;  %vm267_vm0 = vcmask (!%p167_p9), 261120   ;;  %s189_s14 = sand.u32 (!%p167_p9), 1, %s1550_s16  }
   0xe   : > { %170 = sbr.rel (%p167_p9) target bundleno = 321 (0x141), region = 36  ;;  %v1443_v3 = vpack.c.bf16 (!%p167_p9), %v264_v1, %v263_v0  ;;  %v266_v4 = vld [vmem:[%s2106_s1 + $0x18] sm:$0xff] (!%p167_p9)  ;;  %p193_p10 = scmp.lt.s32.totalorder (!%p167_p9), %s1197_s7, 255  ;;  %vm1051_vm1 = vcmask (!%p167_p9), 523264  }
   0xf   : > { %v1447_v5 = vpack.c.bf16 (!%p167_p9), %v266_v4, %v265_v2  ;;  %s1196_s28 = sshll.u32 (!%p167_p9), %s189_s14, 9  ;;  %s1270_s30 = sshll.u32 (!%p167_p9), %s1609_s19, 13 }
  0x10   : > { %1444 = vmatprep.subr.bf16.mxu0 (!%p167_p9), %v1443_v3  ;;  %1451 = vmatprep.subr.bf16.mxu1 (!%p167_p9), %v1443_v3  ;;  %s1807_s29 = scalar_lea.vmem (!%p167_p9), [#allocation2], %s1196_s28  ;;  %s2064_s8 = scalar_lea.sflag (!%p167_p9), [#allocation3], %s189_s14 }
  0x11   : > { %1446 = vmatpush3.bf16.msra.mxu0 (!%p167_p9), %v1443_v3  ;;  %1453 = vmatpush3.bf16.msra.mxu1 (!%p167_p9), %v1443_v3  ;;  %s1130_s5 = sshll.u32 (!%p167_p9), %s1807_s29, 4  ;;  %s2052_s5 = int_to_ptr.vmem [resolvable:$true] %s1130_s5 }
  0x12   : > { %1448 = vmatprep.subr.bf16.mxu0 (!%p167_p9), %v1447_v5  ;;  %1452 = vmatprep.subr.bf16.mxu1 (!%p167_p9), %v1447_v5  ;;  %s1496_s9 = scalar_lea.vmem (!%p167_p9), %s2052_s5, 8192 }
  0x13   : > { %p1497_p11 = scmp.ne.s32.totalorder (!%p167_p9), %s2052_s5, %s1496_s9 }
  0x15   : > { %s2117_s7 = smov (!%p193_p10, %s1197_s7), 255  ;;  %1450 = vmatpush3.bf16.msra.mxu0 %v1447_v5  ;;  %1454 = vmatpush3.bf16.msra.mxu1 %v1447_v5  ;;  %p1498_p12 = pnand %p1497_p11, %p1626_p5 }
  0x16   : > { %s1198_s10 = sshll.u32 %s2117_s7, 3  ;;  %s2050_s7 = scalar_lea.hbm %s2109_s4, %s1270_s30 }
  0x17   : > { %s1652_s13 = scalar_lea.vmem %s2105_s0, %s1198_s10  ;;  %p1499_p13 = pneg %p1498_p12 }
  0x18   : > { %v199_v6 = vld [vmem:[%s1652_s13] sm:$0xff]  ;;  %v200_v8 = vld [vmem:[%s1652_s13 + $0x8] sm:$0xff]  ;;  %v201_v10 = vld [vmem:[%s1652_s13 + $0x10] sm:$0xff]  ;;  %s1560_s10 = smov [#allocation2]  }
  0x19   : > { %v231_v7 = vld [vmem:[%s1652_s13 + $0x100] sm:$0xff]  ;;  %v232_v9 = vld [vmem:[%s1652_s13 + $0x108] sm:$0xff]  ;;  %1347 = vmatprep.mubr.msk.f32.mxu0 %vm267_vm0, %v199_v6  ;;  %v233_v11 = vld [vmem:[%s1652_s13 + $0x110] sm:$0xff]  ;;  %s1500_s11 = sshll.u32 %s1560_s10, 4  ;;  %s1501_s11 = int_to_ptr.vmem [resolvable:$false] %s1500_s11 }
  0x1a   : > { %1395 = vmatprep.mubr.msk.f32.mxu1 %vm267_vm0, %v231_v7  ;;  %1348 = vmatmul.mubr.msk.f32.vlgmr.msra.gmra.mrb[0].mxu0 %vm267_vm0, %v200_v8  ;;  %v202_v12 = vld [vmem:[%s1652_s13 + $0x18] sm:$0xff]  ;;  %v203_v14 = vld [vmem:[%s1652_s13 + $0x20] sm:$0xff]  ;;  %v204_v16 = vld [vmem:[%s1652_s13 + $0x28] sm:$0xff]  ;;  %s1502_s12 = scalar_lea.vmem %s1501_s11, 16384  ;;  %p1503_p0 = scmp.lt.s32.totalorder %s2052_s5, %s1501_s11 }
  0x1b   : > { %1396 = vmatmul.mubr.msk.f32.vlgmr.msra.gmra.mrb[0].mxu1 %vm267_vm0, %v232_v9  ;;  %1350 = vmatprep.mubr.msk.f32.mxu0 %vm267_vm0, %v201_v10  ;;  %v234_v13 = vld [vmem:[%s1652_s13 + $0x118] sm:$0xff]  ;;  %v235_v15 = vld [vmem:[%s1652_s13 + $0x120] sm:$0xff]  ;;  %v236_v17 = vld [vmem:[%s1652_s13 + $0x128] sm:$0xff]  ;;  %p1504_p1 = scmp.lt.s32.totalorder %s1502_s12, %s1496_s9 }
  0x1c   : > { %1398 = vmatprep.mubr.msk.f32.mxu1 %vm267_vm0, %v233_v11  ;;  %v205_v18 = vld [vmem:[%s1652_s13 + $0x30] sm:$0xff]  ;;  %v206_v20 = vld [vmem:[%s1652_s13 + $0x38] sm:$0xff]  ;;  %v207_v22 = vld [vmem:[%s1652_s13 + $0x40] sm:$0xff] }
  0x1d   : > { %v237_v19 = vld [vmem:[%s1652_s13 + $0x130] sm:$0xff]  ;;  %v238_v21 = vld [vmem:[%s1652_s13 + $0x138] sm:$0xff]  ;;  %v239_v23 = vld [vmem:[%s1652_s13 + $0x140] sm:$0xff]  ;;  %p1505_p2 = por %p1504_p1, %p1503_p0 }
  0x1e   : > { %1351 = vmatmul.mubr.msk.f32.gmra.mrb[2].mxu0 %vm267_vm0, %v202_v12  ;;  %v208_v24 = vld [vmem:[%s1652_s13 + $0x48] sm:$0xff]  ;;  %v209_v26 = vld [vmem:[%s1652_s13 + $0x50] sm:$0xff]  ;;  %v210_v28 = vld [vmem:[%s1652_s13 + $0x58] sm:$0xff] }
  0x1f   : > { %1399 = vmatmul.mubr.msk.f32.gmra.mrb[2].mxu1 %vm267_vm0, %v234_v13  ;;  %1353 = vmatprep.mubr.msk.f32.mxu0 %vm267_vm0, %v203_v14  ;;  %v240_v25 = vld [vmem:[%s1652_s13 + $0x148] sm:$0xff]  ;;  %v241_v27 = vld [vmem:[%s1652_s13 + $0x150] sm:$0xff]  ;;  %v242_v29 = vld [vmem:[%s1652_s13 + $0x158] sm:$0xff]  ;;  %p1506_p3 = pnand %p1505_p2, %p1499_p13 }
  0x20   : > { %1401 = vmatprep.mubr.msk.f32.mxu1 %vm267_vm0, %v235_v15  ;;  %v211_v30 = vld [vmem:[%s1652_s13 + $0x60] sm:$0xff]  ;;  %v212_v32 = vld [vmem:[%s1652_s13 + $0x68] sm:$0xff]  ;;  %v213_v34 = vld [vmem:[%s1652_s13 + $0x70] sm:$0xff] }
  0x21   : > { %v243_v31 = vld [vmem:[%s1652_s13 + $0x160] sm:$0xff]  ;;  %v244_v33 = vld [vmem:[%s1652_s13 + $0x168] sm:$0xff]  ;;  %v245_v35 = vld [vmem:[%s1652_s13 + $0x170] sm:$0xff] }
  0x22   : > { %1354 = vmatmul.mubr.msk.f32.gmra.mrb[4].mxu0 %vm267_vm0, %v204_v16  ;;  %v214_v36 = vld [vmem:[%s1652_s13 + $0x78] sm:$0xff]  ;;  %v215_v38 = vld [vmem:[%s1652_s13 + $0x80] sm:$0xff]  ;;  %v216_v40 = vld [vmem:[%s1652_s13 + $0x88] sm:$0xff] }
  0x23   : > { %1402 = vmatmul.mubr.msk.f32.gmra.mrb[4].mxu1 %vm267_vm0, %v236_v17  ;;  %1356 = vmatprep.mubr.msk.f32.mxu0 %vm267_vm0, %v205_v18  ;;  %v246_v37 = vld [vmem:[%s1652_s13 + $0x178] sm:$0xff]  ;;  %v247_v39 = vld [vmem:[%s1652_s13 + $0x180] sm:$0xff]  ;;  %v248_v41 = vld [vmem:[%s1652_s13 + $0x188] sm:$0xff] }
  0x24   : > { %1404 = vmatprep.mubr.msk.f32.mxu1 %vm267_vm0, %v237_v19  ;;  %v217_v42 = vld [vmem:[%s1652_s13 + $0x90] sm:$0xff]  ;;  %v218_v44 = vld [vmem:[%s1652_s13 + $0x98] sm:$0xff]  ;;  %v219_v46 = vld [vmem:[%s1652_s13 + $0xa0] sm:$0xff] }
  0x25   : > { %v249_v43 = vld [vmem:[%s1652_s13 + $0x190] sm:$0xff]  ;;  %v250_v45 = vld [vmem:[%s1652_s13 + $0x198] sm:$0xff]  ;;  %v251_v47 = vld [vmem:[%s1652_s13 + $0x1a0] sm:$0xff] }
  0x26   : > { %1357 = vmatmul.mubr.msk.f32.gmra.mrb[6].mxu0 %vm267_vm0, %v206_v20  ;;  %v220_v48 = vld [vmem:[%s1652_s13 + $0xa8] sm:$0xff]  ;;  %v221_v50 = vld [vmem:[%s1652_s13 + $0xb0] sm:$0xff]  ;;  %v222_v52 = vld [vmem:[%s1652_s13 + $0xb8] sm:$0xff] }
  0x27   : > { %1405 = vmatmul.mubr.msk.f32.gmra.mrb[6].mxu1 %vm267_vm0, %v238_v21  ;;  %1359 = vmatprep.mubr.msk.f32.mxu0 %vm267_vm0, %v207_v22  ;;  %v252_v49 = vld [vmem:[%s1652_s13 + $0x1a8] sm:$0xff]  ;;  %v253_v51 = vld [vmem:[%s1652_s13 + $0x1b0] sm:$0xff]  ;;  %v254_v53 = vld [vmem:[%s1652_s13 + $0x1b8] sm:$0xff] }
  0x28   : > { %1407 = vmatprep.mubr.msk.f32.mxu1 %vm267_vm0, %v239_v23  ;;  %v223_v54 = vld [vmem:[%s1652_s13 + $0xc0] sm:$0xff]  ;;  %v224_v56 = vld [vmem:[%s1652_s13 + $0xc8] sm:$0xff]  ;;  %v225_v58 = vld [vmem:[%s1652_s13 + $0xd0] sm:$0xff] }
  0x29   : > { %v255_v55 = vld [vmem:[%s1652_s13 + $0x1c0] sm:$0xff]  ;;  %v256_v57 = vld [vmem:[%s1652_s13 + $0x1c8] sm:$0xff]  ;;  %v257_v59 = vld [vmem:[%s1652_s13 + $0x1d0] sm:$0xff] }
  0x2a   : > { %1360 = vmatmul.mubr.msk.f32.gmra.mrb[8].mxu0 %vm267_vm0, %v208_v24  ;;  %v226_v60 = vld [vmem:[%s1652_s13 + $0xd8] sm:$0xff]  ;;  %v227_v62 = vld [vmem:[%s1652_s13 + $0xe0] sm:$0xff]  ;;  %v228_v0 = vld [vmem:[%s1652_s13 + $0xe8] sm:$0xff] }
  0x2b   : > { %1408 = vmatmul.mubr.msk.f32.gmra.mrb[8].mxu1 %vm267_vm0, %v240_v25  ;;  %1362 = vmatprep.mubr.msk.f32.mxu0 %vm267_vm0, %v209_v26  ;;  %v258_v61 = vld [vmem:[%s1652_s13 + $0x1d8] sm:$0xff]  ;;  %v259_v63 = vld [vmem:[%s1652_s13 + $0x1e0] sm:$0xff]  ;;  %v260_v1 = vld [vmem:[%s1652_s13 + $0x1e8] sm:$0xff] }
  0x2c   : > { %1410 = vmatprep.mubr.msk.f32.mxu1 %vm267_vm0, %v241_v27  ;;  %v229_v2 = vld [vmem:[%s1652_s13 + $0xf0] sm:$0xff]  ;;  %v230_v4 = vld [vmem:[%s1652_s13 + $0xf8] sm:$0xff]  ;;  %v1786_v6 = vld [vmem:[%s2107_s2] ss:$0 sm:$0xff] }
  0x2d   : > { %v261_v3 = vld [vmem:[%s1652_s13 + $0x1f0] sm:$0xff]  ;;  %v262_v5 = vld [vmem:[%s1652_s13 + $0x1f8] sm:$0xff]  ;;  %v1791_v8 = vld [vmem:[%s2108_s3] ss:$0 sm:$0xff] }
  0x2e   : > { %1363 = vmatmul.mubr.msk.f32.gmra.mrb[10].mxu0 %vm267_vm0, %v210_v28 }
  0x2f   : > { %1411 = vmatmul.mubr.msk.f32.gmra.mrb[10].mxu1 %vm267_vm0, %v242_v29  ;;  %1365 = vmatprep.mubr.msk.f32.mxu0 %vm267_vm0, %v211_v30 }
  0x30   : > { %1413 = vmatprep.mubr.msk.f32.mxu1 %vm267_vm0, %v243_v31 }
  0x32   : > { %1366 = vmatmul.mubr.msk.f32.gmra.mrb[12].mxu0 %vm267_vm0, %v212_v32 }
  0x33   : > { %1414 = vmatmul.mubr.msk.f32.gmra.mrb[12].mxu1 %vm267_vm0, %v244_v33  ;;  %1368 = vmatprep.mubr.msk.f32.mxu0 %vm267_vm0, %v213_v34 }
  0x34   : > { %1416 = vmatprep.mubr.msk.f32.mxu1 %vm267_vm0, %v245_v35 }
  0x36   : > { %1369 = vmatmul.mubr.msk.f32.gmra.mrb[14].mxu0 %vm267_vm0, %v214_v36 }
  0x37   : > { %1417 = vmatmul.mubr.msk.f32.gmra.mrb[14].mxu1 %vm267_vm0, %v246_v37  ;;  %1371 = vmatprep.mubr.msk.f32.mxu0 %vm267_vm0, %v215_v38 }
  0x38   : > { %1419 = vmatprep.mubr.msk.f32.mxu1 %vm267_vm0, %v247_v39 }
  0x3a   : > { %1372 = vmatmul.mubr.msk.f32.gmra.mrb[16].mxu0 %vm267_vm0, %v216_v40 }
  0x3b   : > { %1420 = vmatmul.mubr.msk.f32.gmra.mrb[16].mxu1 %vm267_vm0, %v248_v41  ;;  %1374 = vmatprep.mubr.msk.f32.mxu0 %vm267_vm0, %v217_v42 }
  0x3c   : > { %1422 = vmatprep.mubr.msk.f32.mxu1 %vm267_vm0, %v249_v43 }
  0x3e   : > { %1375 = vmatmul.mubr.msk.f32.gmra.mrb[18].mxu0 %vm267_vm0, %v218_v44 }
  0x3f   : > { %1423 = vmatmul.mubr.msk.f32.gmra.mrb[18].mxu1 %vm267_vm0, %v250_v45  ;;  %1377 = vmatprep.mubr.msk.f32.mxu0 %vm267_vm0, %v219_v46 }
  0x40   : > { %1425 = vmatprep.mubr.msk.f32.mxu1 %vm267_vm0, %v251_v47 }
  0x42   : > { %1378 = vmatmul.mubr.msk.f32.gmra.mrb[20].mxu0 %vm267_vm0, %v220_v48 }
  0x43   : > { %1426 = vmatmul.mubr.msk.f32.gmra.mrb[20].mxu1 %vm267_vm0, %v252_v49  ;;  %1380 = vmatprep.mubr.msk.f32.mxu0 %vm267_vm0, %v221_v50 }
  0x44   : > { %1428 = vmatprep.mubr.msk.f32.mxu1 %vm267_vm0, %v253_v51 }
  0x46   : > { %1381 = vmatmul.mubr.msk.f32.gmra.mrb[22].mxu0 %vm267_vm0, %v222_v52 }
  0x47   : > { %1429 = vmatmul.mubr.msk.f32.gmra.mrb[22].mxu1 %vm267_vm0, %v254_v53  ;;  %1383 = vmatprep.mubr.msk.f32.mxu0 %vm267_vm0, %v223_v54 }
  0x48   : > { %1431 = vmatprep.mubr.msk.f32.mxu1 %vm267_vm0, %v255_v55 }
  0x4a   : > { %1384 = vmatmul.mubr.msk.f32.gmra.mrb[24].mxu0 %vm267_vm0, %v224_v56 }
  0x4b   : > { %1432 = vmatmul.mubr.msk.f32.gmra.mrb[24].mxu1 %vm267_vm0, %v256_v57  ;;  %1386 = vmatprep.mubr.msk.f32.mxu0 %vm267_vm0, %v225_v58 }
  0x4c   : > { %1434 = vmatprep.mubr.msk.f32.mxu1 %vm267_vm0, %v257_v59 }
  0x4e   : > { %1387 = vmatmul.mubr.msk.f32.gmra.mrb[26].mxu0 %vm267_vm0, %v226_v60 }
  0x4f   : > { %1435 = vmatmul.mubr.msk.f32.gmra.mrb[26].mxu1 %vm267_vm0, %v258_v61  ;;  %1389 = vmatprep.mubr.msk.f32.mxu0 %vm267_vm0, %v227_v62 }
  0x50   : > { %1437 = vmatprep.mubr.msk.f32.mxu1 %vm267_vm0, %v259_v63 }
  0x52   : > { %1390 = vmatmul.mubr.msk.f32.gmra.mrb[28].mxu0 %vm267_vm0, %v228_v0 }
  0x53   : > { %1438 = vmatmul.mubr.msk.f32.gmra.mrb[28].mxu1 %vm267_vm0, %v260_v1  ;;  %1392 = vmatprep.mubr.msk.f32.mxu0 %vm267_vm0, %v229_v2 }
  0x54   : > { %1440 = vmatprep.mubr.msk.f32.mxu1 %vm267_vm0, %v261_v3 }
  0x56   : > { %1393 = vmatmul.mubr.msk.f32.gmra.mrb[30].mxu0 %vm267_vm0, %v230_v4 }
  0x57   : > { %1441 = vmatmul.mubr.msk.f32.gmra.mrb[30].mxu1 %vm267_vm0, %v262_v5 }
  0xed   : > { %v1349_v7 = vpop.f32.mrb[0].mxu0 }
  0xee   : > { %v1397_v9 = vpop.f32.mrb[0].mxu1  ;;  %v853_v10 = vmul.f32 %v1349_v7, %v1786_v6  ;;  %v526_v12 = vpop.f32.mrb[1].mxu0 }
  0xef   : > { %v885_v11 = vmul.f32 %v1397_v9, %v1786_v6  ;;  %v686_v13 = vpop.f32.mrb[1].mxu1  ;;  %v852_v14 = vmul.f32 %v1786_v6, %v526_v12 }
  0xf0   : > { %v884_v15 = vmul.f32 %v1786_v6, %v686_v13  ;;  %v924_v16 = vadd.f32 %v1791_v8, %v853_v10 }
  0xf1   : > { %v956_v17 = vadd.f32 %v1791_v8, %v885_v11  ;;  %v923_v18 = vadd.f32 %v1791_v8, %v852_v14  ;;  %v1352_v20 = vpop.f32.mrb[2].mxu0 }
  0xf2   : > { %v955_v19 = vadd.f32 %v1791_v8, %v884_v15  ;;  %v1400_v21 = vpop.f32.mrb[2].mxu1  ;;  %v988_v22 = vmax.f32 %v924_v16, 0.0  ;;  %v855_v24 = vmul.f32 %v1352_v20, %v1786_v6  ;;  %v536_v26 = vpop.f32.mrb[3].mxu0 }
  0xf3   : > { %v1020_v23 = vmax.f32 %v956_v17, 0.0  ;;  %v887_v25 = vmul.f32 %v1400_v21, %v1786_v6  ;;  %v696_v27 = vpop.f32.mrb[3].mxu1  ;;  %v987_v28 = vmax.f32 %v923_v18, 0.0  ;;  %v854_v30 = vmul.f32 %v1786_v6, %v536_v26 }
  0xf4   : > { %v1019_v29 = vmax.f32 %v955_v19, 0.0  ;;  %v886_v31 = vmul.f32 %v1786_v6, %v696_v27  ;;  %1053 = vst.msk [vmem:[%s1807_s29 + $0x8] sm:$0xff] %vm1051_vm1, %v988_v22  ;;  %v926_v32 = vadd.f32 %v1791_v8, %v855_v24 }
  0xf5   : > { %1085 = vst.msk [vmem:[%s1807_s29 + $0x108] sm:$0xff] %vm1051_vm1, %v1020_v23  ;;  %v958_v33 = vadd.f32 %v1791_v8, %v887_v25  ;;  %1052 = vst.msk [vmem:[%s1807_s29] sm:$0xff] %vm1051_vm1, %v987_v28  ;;  %v925_v34 = vadd.f32 %v1791_v8, %v854_v30  ;;  %v1355_v36 = vpop.f32.mrb[4].mxu0 }
  0xf6   : > { %1084 = vst.msk [vmem:[%s1807_s29 + $0x100] sm:$0xff] %vm1051_vm1, %v1019_v29  ;;  %v957_v35 = vadd.f32 %v1791_v8, %v886_v31  ;;  %v1403_v37 = vpop.f32.mrb[4].mxu1  ;;  %v990_v38 = vmax.f32 %v926_v32, 0.0  ;;  %v857_v40 = vmul.f32 %v1355_v36, %v1786_v6  ;;  %v546_v42 = vpop.f32.mrb[5].mxu0 }
  0xf7   : > { %v1022_v39 = vmax.f32 %v958_v33, 0.0  ;;  %v889_v41 = vmul.f32 %v1403_v37, %v1786_v6  ;;  %v706_v43 = vpop.f32.mrb[5].mxu1  ;;  %v989_v44 = vmax.f32 %v925_v34, 0.0  ;;  %v856_v46 = vmul.f32 %v1786_v6, %v546_v42 }
  0xf8   : > { %v1021_v45 = vmax.f32 %v957_v35, 0.0  ;;  %v888_v47 = vmul.f32 %v1786_v6, %v706_v43  ;;  %1055 = vst.msk [vmem:[%s1807_s29 + $0x18] sm:$0xff] %vm1051_vm1, %v990_v38  ;;  %v928_v48 = vadd.f32 %v1791_v8, %v857_v40 }
  0xf9   : > { %1087 = vst.msk [vmem:[%s1807_s29 + $0x118] sm:$0xff] %vm1051_vm1, %v1022_v39  ;;  %v960_v49 = vadd.f32 %v1791_v8, %v889_v41  ;;  %1054 = vst.msk [vmem:[%s1807_s29 + $0x10] sm:$0xff] %vm1051_vm1, %v989_v44  ;;  %v927_v50 = vadd.f32 %v1791_v8, %v856_v46  ;;  %v1358_v52 = vpop.f32.mrb[6].mxu0 }
  0xfa   : > { %1086 = vst.msk [vmem:[%s1807_s29 + $0x110] sm:$0xff] %vm1051_vm1, %v1021_v45  ;;  %v959_v51 = vadd.f32 %v1791_v8, %v888_v47  ;;  %v1406_v53 = vpop.f32.mrb[6].mxu1  ;;  %v992_v54 = vmax.f32 %v928_v48, 0.0  ;;  %v859_v56 = vmul.f32 %v1358_v52, %v1786_v6  ;;  %v556_v58 = vpop.f32.mrb[7].mxu0 }
  0xfb   : > { %v1024_v55 = vmax.f32 %v960_v49, 0.0  ;;  %v891_v57 = vmul.f32 %v1406_v53, %v1786_v6  ;;  %v716_v59 = vpop.f32.mrb[7].mxu1  ;;  %v991_v60 = vmax.f32 %v927_v50, 0.0  ;;  %v858_v62 = vmul.f32 %v1786_v6, %v556_v58 }
  0xfc   : > { %v1023_v61 = vmax.f32 %v959_v51, 0.0  ;;  %v890_v63 = vmul.f32 %v1786_v6, %v716_v59  ;;  %1057 = vst.msk [vmem:[%s1807_s29 + $0x28] sm:$0xff] %vm1051_vm1, %v992_v54  ;;  %v930_v0 = vadd.f32 %v1791_v8, %v859_v56 }
  0xfd   : > { %1089 = vst.msk [vmem:[%s1807_s29 + $0x128] sm:$0xff] %vm1051_vm1, %v1024_v55  ;;  %v962_v1 = vadd.f32 %v1791_v8, %v891_v57  ;;  %1056 = vst.msk [vmem:[%s1807_s29 + $0x20] sm:$0xff] %vm1051_vm1, %v991_v60  ;;  %v929_v2 = vadd.f32 %v1791_v8, %v858_v62  ;;  %v1361_v4 = vpop.f32.mrb[8].mxu0 }
  0xfe   : > { %1088 = vst.msk [vmem:[%s1807_s29 + $0x120] sm:$0xff] %vm1051_vm1, %v1023_v61  ;;  %v961_v3 = vadd.f32 %v1791_v8, %v890_v63  ;;  %v1409_v5 = vpop.f32.mrb[8].mxu1  ;;  %v994_v7 = vmax.f32 %v930_v0, 0.0  ;;  %v861_v10 = vmul.f32 %v1361_v4, %v1786_v6  ;;  %v566_v12 = vpop.f32.mrb[9].mxu0 }
  0xff   : > { %v1026_v9 = vmax.f32 %v962_v1, 0.0  ;;  %v893_v11 = vmul.f32 %v1409_v5, %v1786_v6  ;;  %v726_v13 = vpop.f32.mrb[9].mxu1  ;;  %v993_v14 = vmax.f32 %v929_v2, 0.0  ;;  %v860_v16 = vmul.f32 %v1786_v6, %v566_v12 }
 0x100   : > { %v1025_v15 = vmax.f32 %v961_v3, 0.0  ;;  %v892_v17 = vmul.f32 %v1786_v6, %v726_v13  ;;  %1059 = vst.msk [vmem:[%s1807_s29 + $0x38] sm:$0xff] %vm1051_vm1, %v994_v7  ;;  %v932_v18 = vadd.f32 %v1791_v8, %v861_v10 }
 0x101   : > { %1091 = vst.msk [vmem:[%s1807_s29 + $0x138] sm:$0xff] %vm1051_vm1, %v1026_v9  ;;  %v964_v19 = vadd.f32 %v1791_v8, %v893_v11  ;;  %1058 = vst.msk [vmem:[%s1807_s29 + $0x30] sm:$0xff] %vm1051_vm1, %v993_v14  ;;  %v931_v20 = vadd.f32 %v1791_v8, %v860_v16  ;;  %v1364_v22 = vpop.f32.mrb[10].mxu0 }
 0x102   : > { %1090 = vst.msk [vmem:[%s1807_s29 + $0x130] sm:$0xff] %vm1051_vm1, %v1025_v15  ;;  %v963_v21 = vadd.f32 %v1791_v8, %v892_v17  ;;  %v1412_v23 = vpop.f32.mrb[10].mxu1  ;;  %v996_v24 = vmax.f32 %v932_v18, 0.0  ;;  %v863_v26 = vmul.f32 %v1364_v22, %v1786_v6  ;;  %v576_v28 = vpop.f32.mrb[11].mxu0 }
 0x103   : > { %v1028_v25 = vmax.f32 %v964_v19, 0.0  ;;  %v895_v27 = vmul.f32 %v1412_v23, %v1786_v6  ;;  %v736_v29 = vpop.f32.mrb[11].mxu1  ;;  %v995_v30 = vmax.f32 %v931_v20, 0.0  ;;  %v862_v32 = vmul.f32 %v1786_v6, %v576_v28 }
 0x104   : > { %v1027_v31 = vmax.f32 %v963_v21, 0.0  ;;  %v894_v33 = vmul.f32 %v1786_v6, %v736_v29  ;;  %1061 = vst.msk [vmem:[%s1807_s29 + $0x48] sm:$0xff] %vm1051_vm1, %v996_v24  ;;  %v934_v34 = vadd.f32 %v1791_v8, %v863_v26 }
 0x105   : > { %1093 = vst.msk [vmem:[%s1807_s29 + $0x148] sm:$0xff] %vm1051_vm1, %v1028_v25  ;;  %v966_v35 = vadd.f32 %v1791_v8, %v895_v27  ;;  %1060 = vst.msk [vmem:[%s1807_s29 + $0x40] sm:$0xff] %vm1051_vm1, %v995_v30  ;;  %v933_v36 = vadd.f32 %v1791_v8, %v862_v32  ;;  %v1367_v38 = vpop.f32.mrb[12].mxu0 }
 0x106   : > { %1092 = vst.msk [vmem:[%s1807_s29 + $0x140] sm:$0xff] %vm1051_vm1, %v1027_v31  ;;  %v965_v37 = vadd.f32 %v1791_v8, %v894_v33  ;;  %v1415_v39 = vpop.f32.mrb[12].mxu1  ;;  %v998_v40 = vmax.f32 %v934_v34, 0.0  ;;  %v865_v42 = vmul.f32 %v1367_v38, %v1786_v6  ;;  %v586_v44 = vpop.f32.mrb[13].mxu0 }
 0x107   : > { %v1030_v41 = vmax.f32 %v966_v35, 0.0  ;;  %v897_v43 = vmul.f32 %v1415_v39, %v1786_v6  ;;  %v746_v45 = vpop.f32.mrb[13].mxu1  ;;  %v997_v46 = vmax.f32 %v933_v36, 0.0  ;;  %v864_v48 = vmul.f32 %v1786_v6, %v586_v44 }
 0x108   : > { %v1029_v47 = vmax.f32 %v965_v37, 0.0  ;;  %v896_v49 = vmul.f32 %v1786_v6, %v746_v45  ;;  %1063 = vst.msk [vmem:[%s1807_s29 + $0x58] sm:$0xff] %vm1051_vm1, %v998_v40  ;;  %v936_v50 = vadd.f32 %v1791_v8, %v865_v42 }
 0x109   : > { %1095 = vst.msk [vmem:[%s1807_s29 + $0x158] sm:$0xff] %vm1051_vm1, %v1030_v41  ;;  %v968_v51 = vadd.f32 %v1791_v8, %v897_v43  ;;  %1062 = vst.msk [vmem:[%s1807_s29 + $0x50] sm:$0xff] %vm1051_vm1, %v997_v46  ;;  %v935_v52 = vadd.f32 %v1791_v8, %v864_v48  ;;  %v1370_v54 = vpop.f32.mrb[14].mxu0 }
 0x10a   : > { %1094 = vst.msk [vmem:[%s1807_s29 + $0x150] sm:$0xff] %vm1051_vm1, %v1029_v47  ;;  %v967_v53 = vadd.f32 %v1791_v8, %v896_v49  ;;  %v1418_v55 = vpop.f32.mrb[14].mxu1  ;;  %v1000_v56 = vmax.f32 %v936_v50, 0.0  ;;  %v867_v58 = vmul.f32 %v1370_v54, %v1786_v6  ;;  %v596_v60 = vpop.f32.mrb[15].mxu0 }
 0x10b   : > { %v1032_v57 = vmax.f32 %v968_v51, 0.0  ;;  %v899_v59 = vmul.f32 %v1418_v55, %v1786_v6  ;;  %v756_v61 = vpop.f32.mrb[15].mxu1  ;;  %v999_v62 = vmax.f32 %v935_v52, 0.0  ;;  %v866_v0 = vmul.f32 %v1786_v6, %v596_v60 }
 0x10c   : > { %v1031_v63 = vmax.f32 %v967_v53, 0.0  ;;  %v898_v1 = vmul.f32 %v1786_v6, %v756_v61  ;;  %1065 = vst.msk [vmem:[%s1807_s29 + $0x68] sm:$0xff] %vm1051_vm1, %v1000_v56  ;;  %v938_v2 = vadd.f32 %v1791_v8, %v867_v58 }
 0x10d   : > { %1097 = vst.msk [vmem:[%s1807_s29 + $0x168] sm:$0xff] %vm1051_vm1, %v1032_v57  ;;  %v970_v3 = vadd.f32 %v1791_v8, %v899_v59  ;;  %1064 = vst.msk [vmem:[%s1807_s29 + $0x60] sm:$0xff] %vm1051_vm1, %v999_v62  ;;  %v937_v4 = vadd.f32 %v1791_v8, %v866_v0  ;;  %v1373_v7 = vpop.f32.mrb[16].mxu0 }
 0x10e   : > { %1096 = vst.msk [vmem:[%s1807_s29 + $0x160] sm:$0xff] %vm1051_vm1, %v1031_v63  ;;  %v969_v5 = vadd.f32 %v1791_v8, %v898_v1  ;;  %v1421_v9 = vpop.f32.mrb[16].mxu1  ;;  %v1002_v10 = vmax.f32 %v938_v2, 0.0  ;;  %v869_v12 = vmul.f32 %v1373_v7, %v1786_v6  ;;  %v606_v14 = vpop.f32.mrb[17].mxu0 }
 0x10f   : > { %v1034_v11 = vmax.f32 %v970_v3, 0.0  ;;  %v901_v13 = vmul.f32 %v1421_v9, %v1786_v6  ;;  %v766_v15 = vpop.f32.mrb[17].mxu1  ;;  %v1001_v16 = vmax.f32 %v937_v4, 0.0  ;;  %v868_v18 = vmul.f32 %v1786_v6, %v606_v14 }
 0x110   : > { %v1033_v17 = vmax.f32 %v969_v5, 0.0  ;;  %v900_v19 = vmul.f32 %v1786_v6, %v766_v15  ;;  %1067 = vst.msk [vmem:[%s1807_s29 + $0x78] sm:$0xff] %vm1051_vm1, %v1002_v10  ;;  %v940_v20 = vadd.f32 %v1791_v8, %v869_v12 }
 0x111   : > { %1099 = vst.msk [vmem:[%s1807_s29 + $0x178] sm:$0xff] %vm1051_vm1, %v1034_v11  ;;  %v972_v21 = vadd.f32 %v1791_v8, %v901_v13  ;;  %1066 = vst.msk [vmem:[%s1807_s29 + $0x70] sm:$0xff] %vm1051_vm1, %v1001_v16  ;;  %v939_v22 = vadd.f32 %v1791_v8, %v868_v18  ;;  %v1376_v24 = vpop.f32.mrb[18].mxu0 }
 0x112   : > { %1098 = vst.msk [vmem:[%s1807_s29 + $0x170] sm:$0xff] %vm1051_vm1, %v1033_v17  ;;  %v971_v23 = vadd.f32 %v1791_v8, %v900_v19  ;;  %v1424_v25 = vpop.f32.mrb[18].mxu1  ;;  %v1004_v26 = vmax.f32 %v940_v20, 0.0  ;;  %v871_v28 = vmul.f32 %v1376_v24, %v1786_v6  ;;  %v616_v30 = vpop.f32.mrb[19].mxu0 }
 0x113   : > { %v1036_v27 = vmax.f32 %v972_v21, 0.0  ;;  %v903_v29 = vmul.f32 %v1424_v25, %v1786_v6  ;;  %v776_v31 = vpop.f32.mrb[19].mxu1  ;;  %v1003_v32 = vmax.f32 %v939_v22, 0.0  ;;  %v870_v34 = vmul.f32 %v1786_v6, %v616_v30 }
 0x114   : > { %v1035_v33 = vmax.f32 %v971_v23, 0.0  ;;  %v902_v35 = vmul.f32 %v1786_v6, %v776_v31  ;;  %1069 = vst.msk [vmem:[%s1807_s29 + $0x88] sm:$0xff] %vm1051_vm1, %v1004_v26  ;;  %v942_v36 = vadd.f32 %v1791_v8, %v871_v28 }
 0x115   : > { %1101 = vst.msk [vmem:[%s1807_s29 + $0x188] sm:$0xff] %vm1051_vm1, %v1036_v27  ;;  %v974_v37 = vadd.f32 %v1791_v8, %v903_v29  ;;  %1068 = vst.msk [vmem:[%s1807_s29 + $0x80] sm:$0xff] %vm1051_vm1, %v1003_v32  ;;  %v941_v38 = vadd.f32 %v1791_v8, %v870_v34  ;;  %v1379_v40 = vpop.f32.mrb[20].mxu0 }
 0x116   : > { %1100 = vst.msk [vmem:[%s1807_s29 + $0x180] sm:$0xff] %vm1051_vm1, %v1035_v33  ;;  %v973_v39 = vadd.f32 %v1791_v8, %v902_v35  ;;  %v1427_v41 = vpop.f32.mrb[20].mxu1  ;;  %v1006_v42 = vmax.f32 %v942_v36, 0.0  ;;  %v873_v44 = vmul.f32 %v1379_v40, %v1786_v6  ;;  %v626_v46 = vpop.f32.mrb[21].mxu0 }
 0x117   : > { %v1038_v43 = vmax.f32 %v974_v37, 0.0  ;;  %v905_v45 = vmul.f32 %v1427_v41, %v1786_v6  ;;  %v786_v47 = vpop.f32.mrb[21].mxu1  ;;  %v1005_v48 = vmax.f32 %v941_v38, 0.0  ;;  %v872_v50 = vmul.f32 %v1786_v6, %v626_v46 }
 0x118   : > { %v1037_v49 = vmax.f32 %v973_v39, 0.0  ;;  %v904_v51 = vmul.f32 %v1786_v6, %v786_v47  ;;  %1071 = vst.msk [vmem:[%s1807_s29 + $0x98] sm:$0xff] %vm1051_vm1, %v1006_v42  ;;  %v944_v52 = vadd.f32 %v1791_v8, %v873_v44 }
 0x119   : > { %1103 = vst.msk [vmem:[%s1807_s29 + $0x198] sm:$0xff] %vm1051_vm1, %v1038_v43  ;;  %v976_v53 = vadd.f32 %v1791_v8, %v905_v45  ;;  %1070 = vst.msk [vmem:[%s1807_s29 + $0x90] sm:$0xff] %vm1051_vm1, %v1005_v48  ;;  %v943_v54 = vadd.f32 %v1791_v8, %v872_v50  ;;  %v1382_v56 = vpop.f32.mrb[22].mxu0 }
 0x11a   : > { %1102 = vst.msk [vmem:[%s1807_s29 + $0x190] sm:$0xff] %vm1051_vm1, %v1037_v49  ;;  %v975_v55 = vadd.f32 %v1791_v8, %v904_v51  ;;  %v1430_v57 = vpop.f32.mrb[22].mxu1  ;;  %v1008_v58 = vmax.f32 %v944_v52, 0.0  ;;  %v875_v60 = vmul.f32 %v1382_v56, %v1786_v6  ;;  %v636_v62 = vpop.f32.mrb[23].mxu0 }
 0x11b   : > { %v1040_v59 = vmax.f32 %v976_v53, 0.0  ;;  %v907_v61 = vmul.f32 %v1430_v57, %v1786_v6  ;;  %v796_v63 = vpop.f32.mrb[23].mxu1  ;;  %v1007_v0 = vmax.f32 %v943_v54, 0.0  ;;  %v874_v2 = vmul.f32 %v1786_v6, %v636_v62 }
 0x11c   : > { %v1039_v1 = vmax.f32 %v975_v55, 0.0  ;;  %v906_v3 = vmul.f32 %v1786_v6, %v796_v63  ;;  %1073 = vst.msk [vmem:[%s1807_s29 + $0xa8] sm:$0xff] %vm1051_vm1, %v1008_v58  ;;  %v946_v4 = vadd.f32 %v1791_v8, %v875_v60 }
 0x11d   : > { %1105 = vst.msk [vmem:[%s1807_s29 + $0x1a8] sm:$0xff] %vm1051_vm1, %v1040_v59  ;;  %v978_v5 = vadd.f32 %v1791_v8, %v907_v61  ;;  %1072 = vst.msk [vmem:[%s1807_s29 + $0xa0] sm:$0xff] %vm1051_vm1, %v1007_v0  ;;  %v945_v7 = vadd.f32 %v1791_v8, %v874_v2  ;;  %v1385_v10 = vpop.f32.mrb[24].mxu0 }
 0x11e   : > { %1104 = vst.msk [vmem:[%s1807_s29 + $0x1a0] sm:$0xff] %vm1051_vm1, %v1039_v1  ;;  %v977_v9 = vadd.f32 %v1791_v8, %v906_v3  ;;  %v1433_v11 = vpop.f32.mrb[24].mxu1  ;;  %v1010_v12 = vmax.f32 %v946_v4, 0.0  ;;  %v877_v14 = vmul.f32 %v1385_v10, %v1786_v6  ;;  %v646_v16 = vpop.f32.mrb[25].mxu0 }
 0x11f   : > { %v1042_v13 = vmax.f32 %v978_v5, 0.0  ;;  %v909_v15 = vmul.f32 %v1433_v11, %v1786_v6  ;;  %v806_v17 = vpop.f32.mrb[25].mxu1  ;;  %v1009_v18 = vmax.f32 %v945_v7, 0.0  ;;  %v876_v20 = vmul.f32 %v1786_v6, %v646_v16 }
 0x120   : > { %v1041_v19 = vmax.f32 %v977_v9, 0.0  ;;  %v908_v21 = vmul.f32 %v1786_v6, %v806_v17  ;;  %1075 = vst.msk [vmem:[%s1807_s29 + $0xb8] sm:$0xff] %vm1051_vm1, %v1010_v12  ;;  %v948_v22 = vadd.f32 %v1791_v8, %v877_v14 }
 0x121   : > { %1107 = vst.msk [vmem:[%s1807_s29 + $0x1b8] sm:$0xff] %vm1051_vm1, %v1042_v13  ;;  %v980_v23 = vadd.f32 %v1791_v8, %v909_v15  ;;  %1074 = vst.msk [vmem:[%s1807_s29 + $0xb0] sm:$0xff] %vm1051_vm1, %v1009_v18  ;;  %v947_v24 = vadd.f32 %v1791_v8, %v876_v20  ;;  %v1388_v26 = vpop.f32.mrb[26].mxu0 }
 0x122   : > { %1106 = vst.msk [vmem:[%s1807_s29 + $0x1b0] sm:$0xff] %vm1051_vm1, %v1041_v19  ;;  %v979_v25 = vadd.f32 %v1791_v8, %v908_v21  ;;  %v1436_v27 = vpop.f32.mrb[26].mxu1  ;;  %v1012_v28 = vmax.f32 %v948_v22, 0.0  ;;  %v879_v30 = vmul.f32 %v1388_v26, %v1786_v6  ;;  %v656_v32 = vpop.f32.mrb[27].mxu0 }
 0x123   : > { %v1044_v29 = vmax.f32 %v980_v23, 0.0  ;;  %v911_v31 = vmul.f32 %v1436_v27, %v1786_v6  ;;  %v816_v33 = vpop.f32.mrb[27].mxu1  ;;  %v1011_v34 = vmax.f32 %v947_v24, 0.0  ;;  %v878_v36 = vmul.f32 %v1786_v6, %v656_v32 }
 0x124   : > { %v1043_v35 = vmax.f32 %v979_v25, 0.0  ;;  %v910_v37 = vmul.f32 %v1786_v6, %v816_v33  ;;  %1077 = vst.msk [vmem:[%s1807_s29 + $0xc8] sm:$0xff] %vm1051_vm1, %v1012_v28  ;;  %v950_v38 = vadd.f32 %v1791_v8, %v879_v30 }
 0x125   : > { %1109 = vst.msk [vmem:[%s1807_s29 + $0x1c8] sm:$0xff] %vm1051_vm1, %v1044_v29  ;;  %v982_v39 = vadd.f32 %v1791_v8, %v911_v31  ;;  %1076 = vst.msk [vmem:[%s1807_s29 + $0xc0] sm:$0xff] %vm1051_vm1, %v1011_v34  ;;  %v949_v40 = vadd.f32 %v1791_v8, %v878_v36  ;;  %v1391_v42 = vpop.f32.mrb[28].mxu0 }
 0x126   : > { %1108 = vst.msk [vmem:[%s1807_s29 + $0x1c0] sm:$0xff] %vm1051_vm1, %v1043_v35  ;;  %v981_v41 = vadd.f32 %v1791_v8, %v910_v37  ;;  %v1439_v43 = vpop.f32.mrb[28].mxu1  ;;  %v1014_v44 = vmax.f32 %v950_v38, 0.0  ;;  %v881_v46 = vmul.f32 %v1391_v42, %v1786_v6  ;;  %v666_v48 = vpop.f32.mrb[29].mxu0 }
 0x127   : > { %v1046_v45 = vmax.f32 %v982_v39, 0.0  ;;  %v913_v47 = vmul.f32 %v1439_v43, %v1786_v6  ;;  %v826_v49 = vpop.f32.mrb[29].mxu1  ;;  %v1013_v50 = vmax.f32 %v949_v40, 0.0  ;;  %v880_v52 = vmul.f32 %v1786_v6, %v666_v48 }
 0x128   : > { %v1045_v51 = vmax.f32 %v981_v41, 0.0  ;;  %v912_v53 = vmul.f32 %v1786_v6, %v826_v49  ;;  %1079 = vst.msk [vmem:[%s1807_s29 + $0xd8] sm:$0xff] %vm1051_vm1, %v1014_v44  ;;  %v952_v54 = vadd.f32 %v1791_v8, %v881_v46 }
 0x129   : > { %1111 = vst.msk [vmem:[%s1807_s29 + $0x1d8] sm:$0xff] %vm1051_vm1, %v1046_v45  ;;  %v984_v55 = vadd.f32 %v1791_v8, %v913_v47  ;;  %1078 = vst.msk [vmem:[%s1807_s29 + $0xd0] sm:$0xff] %vm1051_vm1, %v1013_v50  ;;  %v951_v56 = vadd.f32 %v1791_v8, %v880_v52  ;;  %v1394_v58 = vpop.f32.mrb[30].mxu0 }
 0x12a   : > { %1110 = vst.msk [vmem:[%s1807_s29 + $0x1d0] sm:$0xff] %vm1051_vm1, %v1045_v51  ;;  %v983_v57 = vadd.f32 %v1791_v8, %v912_v53  ;;  %v1442_v59 = vpop.f32.mrb[30].mxu1  ;;  %v1016_v60 = vmax.f32 %v952_v54, 0.0  ;;  %v883_v62 = vmul.f32 %v1394_v58, %v1786_v6  ;;  %v676_v0 = vpop.f32.mrb[31].mxu0 }
 0x12b   : > { %v1048_v61 = vmax.f32 %v984_v55, 0.0  ;;  %v915_v63 = vmul.f32 %v1442_v59, %v1786_v6  ;;  %v836_v1 = vpop.f32.mrb[31].mxu1  ;;  %v1015_v2 = vmax.f32 %v951_v56, 0.0  ;;  %v882_v4 = vmul.f32 %v1786_v6, %v676_v0 }
 0x12c   : > { %v1047_v3 = vmax.f32 %v983_v57, 0.0  ;;  %v914_v5 = vmul.f32 %v1786_v6, %v836_v1  ;;  %1081 = vst.msk [vmem:[%s1807_s29 + $0xe8] sm:$0xff] %vm1051_vm1, %v1016_v60  ;;  %v954_v7 = vadd.f32 %v1791_v8, %v883_v62 }
 0x12d   : > { %1113 = vst.msk [vmem:[%s1807_s29 + $0x1e8] sm:$0xff] %vm1051_vm1, %v1048_v61  ;;  %v986_v9 = vadd.f32 %v1791_v8, %v915_v63  ;;  %1080 = vst.msk [vmem:[%s1807_s29 + $0xe0] sm:$0xff] %vm1051_vm1, %v1015_v2  ;;  %v953_v6 = vadd.f32 %v1791_v8, %v882_v4 }
 0x12e   : > { %1112 = vst.msk [vmem:[%s1807_s29 + $0x1e0] sm:$0xff] %vm1051_vm1, %v1047_v3  ;;  %v985_v10 = vadd.f32 %v1791_v8, %v914_v5  ;;  %v1018_v11 = vmax.f32 %v954_v7, 0.0 }
 0x12f   : > { %v1050_v12 = vmax.f32 %v986_v9, 0.0  ;;  %v1017_v13 = vmax.f32 %v953_v6, 0.0 }
 0x130   : > { %v1049_v14 = vmax.f32 %v985_v10, 0.0  ;;  %1083 = vst.msk [vmem:[%s1807_s29 + $0xf8] sm:$0xff] %vm1051_vm1, %v1018_v11 }
 0x131   : > { %1115 = vst.msk [vmem:[%s1807_s29 + $0x1f8] sm:$0xff] %vm1051_vm1, %v1050_v12  ;;  %1082 = vst.msk [vmem:[%s1807_s29 + $0xf0] sm:$0xff] %vm1051_vm1, %v1017_v13 }
 0x132   : > { %1114 = vst.msk [vmem:[%s1807_s29 + $0x1f0] sm:$0xff] %vm1051_vm1, %v1049_v14 }
 0x133   : > { %1509 = shalt.err (!%p1506_p3)
}
 0x134   : > { %s1510_s13 = scalar_lea.hbm %s2050_s7, 8192  ;;  %s1514_s22 = scalar_lea.hbm %s2109_s4, 32768 }
 0x135   : > { %p1511_p4 = scmp.ne.s32.totalorder %s2050_s7, %s1510_s13  ;;  %p1515_p9 = scmp.lt.u32.totalorder %s2050_s7, %s2109_s4 }
 0x136   : > { %p1516_p10 = scmp.lt.u32.totalorder %s1514_s22, %s1510_s13  ;;  %p1518_p12 = scmp.lt.u32.totalorder %s1510_s13, %s2050_s7 }
 0x137   : > { %p1512_p7 = pnand %p1511_p4, %p1626_p5 }
 0x138   : > { %p1517_p11 = por %p1516_p10, %p1515_p9 }
 0x139   : > { %p1513_p8 = pneg %p1512_p7 }
 0x13a   : > { %p1519_p13 = por %p1518_p12, %p1517_p11 }
 0x13c   : > { %p1520_p0 = pnand %p1519_p13, %p1513_p8 }
 0x13e   : > { %1523 = shalt.err (!%p1520_p0)
}
 0x13f   : > { %s1561_s28 = smov 128   ;;  %s1562_s29 = smov 8  }
 0x140   : > { %1455 = dma.vmem_to_hbm [thread:$0]  (%p1626_p5), %s2052_s5, 8192, %s2050_s7, %s2064_s8, %s1561_s28, %s1561_s28, %s1562_s29  }
 0x141 PF: > { %p1461_p1 = scmp.ge.s32.totalorder %s1558_s18, 2  ;;  %s1145_s30 = sand.u32 1, %s1546_s15  }
 0x142   : > { %s1146_s19 = scalar_lea.sflag [#allocation3], %s1145_s30 }
 0x143   : > { %p1458_p2 = pnand %p1461_p1, %p1630_p6 }
 0x145   : > { %1541 = dma.done.wait (!%p1458_p2), %s1146_s19, 8192  }
 0x146   : > { %1543 = vsyncadd (!%p1458_p2), %s1146_s19, 4294959104  ;;  %p14_p3 = scmp.ge.s32.totalorder %s1613_s21, 6   ;;  %s2112_s15 = smov %s1550_s16 }
 0x147   : > { %s2113_s16 = smov %s1554_s17  ;;  %s2114_s17 = smov %s1624_s24 }
 0x148   : > { %s2115_s18 = smov %s1613_s21  ;;  %16 = sbr.rel (!%p14_p3) target bundleno = 3 (0x3), region = 71 }
 0x14f   :  { %1151 = vsyncpa [#allocation3], 1 }
 0x150   :  { %1153 = vsyncpa [#allocation3 + $0x1], 1 }

</bundles_post_ra>
